<compile_context>
chip_gen: v5e
topology: v5e:2x2
jax: 0.10.0
libtpu: 0.0.40
codegen_flags: <defaults>
</compile_context>

<pallas_src>
import jax
import jax.numpy as jnp
from jax.experimental import pallas as pl
from jax.experimental.pallas import tpu as pltpu


def _return_param_kernel(a_ref, o_ref):
    # Forward semantics: `return self.a[0]` — identity over the parameter tile.
    o_ref[...] = a_ref[...]


def _param_identity(a0):
    """Grid-less Pallas call: writes the (3, 4) parameter to the (aliased) output."""
    return pl.pallas_call(
        _return_param_kernel,
        out_shape=jax.ShapeDtypeStruct(a0.shape, a0.dtype),
        in_specs=[pl.BlockSpec(memory_space=pltpu.MemorySpace.VMEM)],
        out_specs=pl.BlockSpec(memory_space=pltpu.MemorySpace.VMEM),
        input_output_aliases={0: 0},
    )(a0)


def net_forward(x, a0):
    """Pallas equivalent of Net.forward: ignores x, returns parameter a0 (3, 4).

    x is intentionally NOT handed to pallas_call — the forward never reads it,
    so DMA-ing it would be pure wasted HBM bandwidth on all of v5e/v6e/v7x.
    """
    del x  # dead input per the module's forward
    return _param_identity(a0)


def init_params():
    # nn.Parameter(torch.zeros(3, 4))
    a0 = jnp.zeros((3, 4), dtype=jnp.float32)
    # Registered buffers b0, b1 = torch.ones(2, 3); unused in forward, kept
    # only for parity with the module's __init__.
    b0 = jnp.ones((2, 3), dtype=jnp.float32)
    b1 = jnp.ones((2, 3), dtype=jnp.float32)
    return a0, (b0, b1)


if __name__ == "__main__":
    key = jax.random.PRNGKey(0)
    # Forward accepts an arbitrary input tensor and ignores it.
    x = jax.random.normal(key, (2, 4, 16, 16), dtype=jnp.float32)

    a0, _buffers = init_params()

    out = net_forward(x, a0)
    out = jax.block_until_ready(out)

    # Reference: forward returns the parameter a[0] unchanged.
    assert out.shape == (3, 4)
    assert out.dtype == jnp.float32
    assert bool(jnp.all(out == a0))

    print("KERNEL_OK")
</pallas_src>

<mosaic_0001>
module attributes {stable_mosaic.version = 11 : i64} {
  func.func @_return_param_kernel(%arg0: memref<3x4xf32, #tpu.memory_space<vmem>>, %arg1: memref<3x4xf32, #tpu.memory_space<vmem>>) attributes {dimension_semantics = [], scalar_prefetch = 0 : i64, scratch_operands = 0 : i64, tpu.core_type = #tpu.core_type<tc>} {
    %c0 = arith.constant 0 : index
    %c0_0 = arith.constant 0 : index
    %0 = vector.load %arg0[%c0, %c0_0] : memref<3x4xf32, #tpu.memory_space<vmem>>, vector<3x4xf32>
    %c0_1 = arith.constant 0 : index
    %c0_2 = arith.constant 0 : index
    %1 = vector.load %arg1[%c0_1, %c0_2] : memref<3x4xf32, #tpu.memory_space<vmem>>, vector<3x4xf32>
    tpu.vector_store %arg1[%c0_1, %c0_2], %0 {strides = array<i32>} : memref<3x4xf32, #tpu.memory_space<vmem>>, vector<3x4xf32>,
    return
  }
}

</mosaic_0001>

<bundles_post_ra>
// kernel: tpu_custom_call.1
= control target key start
LH: loop header
LB: loop body
LE: loop exit
PB: predicated region body
PF: predicated region fallthrough
CT: control target
= control target key end

     0   :  { %6 = vsyncpa [#allocation3], 0  ;;  %s115_s0 = inlined_call_operand.hbm [shape: f32[3,4], index: 0, kind: input, shape index: {}, may-alias: {0,1}]   ;;  %s116_s1 = inlined_call_operand.hbm [shape: f32[3,4], index: 1, kind: output, shape index: {}, may-alias: {0,1}]  }
   0x1   :  { %7 = vsyncpa [#allocation4], 0  ;;  %s13_s8 = sshll.u32 %s115_s0, 4  ;;  %s97_s9 = smov [#allocation2]   ;;  %s14_s8 = int_to_ptr.hbm [resolvable:$true] %s13_s8 }
   0x2   :  { %s15_s10 = sshll.u32 %s97_s9, 4  ;;  %s16_s10 = int_to_ptr.vmem [resolvable:$true] %s15_s10 }
   0x3   :  { %18 = dma.hbm_to_vmem [thread:$0]  %s14_s8, 64, %s16_s10, [#allocation3]  }
   0x4   :  { %93 = dma.done.wait [#allocation3], 64  }
   0x5   :  { %94 = vsyncadd [#allocation3], 4294967232  ;;  %s98_s11 = smov [#allocation5]   ;;  %s33_s15 = sshll.u32 %s116_s1, 4  ;;  %vm24_vm0 = vcmask 26624   ;;  %s34_s15 = int_to_ptr.hbm [resolvable:$true] %s33_s15 }
   0x6   :  { %s31_s12 = sshll.u32 %s98_s11, 4  ;;  %v23_v0 = vld [vmem:[#allocation2] sm:$0x7]  ;;  %s32_s12 = int_to_ptr.vmem [resolvable:$true] %s31_s12 }
   0x7   :  { %25 = vst.msk [vmem:[#allocation5] sm:$0x7] %vm24_vm0, %v23_v0 }
   0x8   :  { %36 = dma.vmem_to_hbm [thread:$0]  %s32_s12, 64, %s34_s15, [#allocation4]  }
   0x9   :  { %95 = dma.done.wait [#allocation4], 64  }
   0xa   :  { %96 = vsyncadd [#allocation4], 4294967232 }
   0xb   :  { %41 = vsyncpa [#allocation3], 1 }
   0xc   :  { %42 = vsyncpa [#allocation4], 1 }

</bundles_post_ra>
